<compile_context>
chip_gen: v7x
topology: tpu7x:2x2x1
jax: 0.10.0
libtpu: 0.0.40
codegen_flags: <defaults>
</compile_context>

<pallas_src>
import math

import jax
import jax.numpy as jnp
from jax.experimental import pallas as pl
from jax.experimental.pallas import tpu as pltpu


# ----------------------------------------------------------------------------- kernels
def _self_attention_kernel(w_ref, x_ref, n_ref, out_ref):
    """Full path.  out[:, :H] = weighted.sum(1), out[:, H:] = (weighted + 1e-5*noise).std(1).

    w_ref:   (1, H)        attention weight vector (shared across the grid)
    x_ref:   (Bb, T, H)    a block of Bb batch rows
    n_ref:   (Bb, T, H)    stabilisation noise (same block indexing as x)
    out_ref: (Bb, 2*H)     fused [avg | std] output slab
    """
    x = x_ref[...].astype(jnp.float32)               # (Bb, T, H)
    w = w_ref[...].astype(jnp.float32)               # (1, H)
    Bb, T, H = x.shape

    # weights = bmm(inputs, att_weights^T); scores = tanh(weights)   -> (Bb, T, 1)
    scores = jnp.tanh(jnp.sum(x * w, axis=-1, keepdims=True))

    # attentions = softmax(scores, dim=seq)  (numerically stabilised)
    m = jnp.max(scores, axis=1, keepdims=True)
    e = jnp.exp(scores - m)
    att = e / jnp.sum(e, axis=1, keepdims=True)

    # weighted = inputs * attentions ; avg_repr = weighted.sum(1)
    weighted = x * att                                # (Bb, T, H)
    avg = jnp.sum(weighted, axis=1)                   # (Bb, H)

    # std_repr = (weighted + 1e-5*noise).std(1)  (unbiased / ddof=1, torch default)
    wn = weighted + jnp.float32(1e-5) * n_ref[...].astype(jnp.float32)
    mean = jnp.sum(wn, axis=1) * jnp.float32(1.0 / T)                        # (Bb, H)
    var = jnp.sum((wn - mean[:, None, :]) ** 2, axis=1) * jnp.float32(1.0 / (T - 1))
    std = jnp.sqrt(var)                                                      # (Bb, H)

    out_ref[:, 0:H] = avg.astype(out_ref.dtype)
    out_ref[:, H:2 * H] = std.astype(out_ref.dtype)


def _self_attention_mean_kernel(w_ref, x_ref, out_ref):
    """mean_only fast path: no noise, no std, single (Bb, H) output."""
    x = x_ref[...].astype(jnp.float32)                # (Bb, T, H)
    w = w_ref[...].astype(jnp.float32)                # (1, H)
    scores = jnp.tanh(jnp.sum(x * w, axis=-1, keepdims=True))
    m = jnp.max(scores, axis=1, keepdims=True)
    e = jnp.exp(scores - m)
    att = e / jnp.sum(e, axis=1, keepdims=True)
    out_ref[...] = jnp.sum(x * att, axis=1).astype(out_ref.dtype)


# ----------------------------------------------------------------------------- wrapper
def _pick_block_b(B, T, H, itemsize, target_block_bytes=1024 * 1024):
    """Rows per grid step: amortize the ~0.35us/step overhead with a large, dense
    HBM tile while staying comfortably inside every generation's VMEM budget
    (1 MiB per input stream * 2 streams * 2 pipeline buffers + in-kernel temps
    << 16 MiB v5e scoped default, and well under v7x's 64 MiB physical VMEM)."""
    rows = max(1, target_block_bytes // max(1, T * H * itemsize))
    if rows >= B:
        return B                       # single block covering the whole batch
    # keep the output block's second-minor dim a multiple of 8 (sublane alignment)
    return max(8, (rows // 8) * 8)


def self_attention(inputs, att_weights, noise=None, key=None, mean_only=False, block_b=None):
    """Pallas implementation of SelfAttention.forward.

    inputs:      (B, T, H) float32
    att_weights: (1, H)    float32
    noise:       optional (B, T, H) standard-normal noise (drawn if None)
    returns:     (B, H) if mean_only else (B, 2*H)  ([avg | std], like torch.cat)
    """
    B, T, H = inputs.shape
    assert att_weights.shape == (1, H)

    if block_b is None:
        block_b = _pick_block_b(B, T, H, jnp.dtype(inputs.dtype).itemsize)
    grid = (pl.cdiv(B, block_b),)

    # TODO(synk): for very long sequences (T*H block too big for VMEM) tile T as an
    # inner 'arbitrary' grid axis with an online-softmax accumulator.
    x_spec = pl.BlockSpec((block_b, T, H), lambda b: (b, 0, 0))
    w_spec = pl.BlockSpec((1, H), lambda b: (0, 0))
    cparams = pltpu.CompilerParams(
        dimension_semantics=("parallel",),          # batch axis shards across TCs on v7x
        vmem_limit_bytes=32 * 1024 * 1024,          # raise v5e's 16 MiB default; <= v7x 64 MiB
    )

    if mean_only:
        return pl.pallas_call(
            _self_attention_mean_kernel,
            out_shape=jax.ShapeDtypeStruct((B, H), inputs.dtype),
            grid=grid,
            in_specs=[w_spec, x_spec],
            out_specs=pl.BlockSpec((block_b, H), lambda b: (b, 0)),
            compiler_params=cparams,
        )(att_weights, inputs)

    if noise is None:
        if key is None:
            key = jax.random.PRNGKey(0)
        noise = jax.random.normal(key, inputs.shape, dtype=jnp.float32)

    return pl.pallas_call(
        _self_attention_kernel,
        out_shape=jax.ShapeDtypeStruct((B, 2 * H), inputs.dtype),
        grid=grid,
        in_specs=[w_spec, x_spec, x_spec],
        out_specs=pl.BlockSpec((block_b, 2 * H), lambda b: (b, 0)),
        compiler_params=cparams,
    )(att_weights, inputs, noise)


# ----------------------------------------------------------------------------- reference
def _reference(inputs, att_weights, noise, mean_only=False):
    """Pure-JAX reference matching the PyTorch forward."""
    scores = jnp.einsum("bth,oh->bto", inputs, att_weights)       # (B, T, 1)
    att = jax.nn.softmax(jnp.tanh(scores), axis=1)                # softmax over seq
    weighted = inputs * att
    avg = weighted.sum(axis=1)
    if mean_only:
        return avg
    std = jnp.std(weighted + 1e-5 * noise, axis=1, ddof=1)        # unbiased, like torch
    return jnp.concatenate([avg, std], axis=1)


if __name__ == "__main__":
    B, T, H = 2, 8, 32
    key = jax.random.PRNGKey(0)
    k_x, k_w, k_n = jax.random.split(key, 3)

    inputs = jax.random.normal(k_x, (B, T, H), dtype=jnp.float32)

    # Deterministic kaiming_uniform-style init for att_weights (1, H):
    # fan_in = H, gain = sqrt(2), bound = gain * sqrt(3 / fan_in) = sqrt(6 / H)
    bound = math.sqrt(6.0 / H)
    att_weights = jax.random.uniform(
        k_w, (1, H), minval=-bound, maxval=bound, dtype=jnp.float32
    )

    # Same noise draw feeds both the kernel and the reference -> tight comparison.
    noise = jax.random.normal(k_n, (B, T, H), dtype=jnp.float32)

    out_full = self_attention(inputs, att_weights, noise=noise, mean_only=False)
    out_mean = self_attention(inputs, att_weights, mean_only=True)
    out_full = jax.block_until_ready(out_full)
    out_mean = jax.block_until_ready(out_mean)

    ref_full = _reference(inputs, att_weights, noise, mean_only=False)
    ref_mean = _reference(inputs, att_weights, noise, mean_only=True)

    assert out_full.shape == (B, 2 * H), out_full.shape
    assert out_mean.shape == (B, H), out_mean.shape
    assert jnp.allclose(out_mean, ref_mean, atol=1e-5, rtol=1e-5), "mean path mismatch"
    assert jnp.allclose(out_full, ref_full, atol=1e-5, rtol=1e-5), "full path mismatch"

    print("KERNEL_OK")
</pallas_src>

<mosaic_0001>
module attributes {stable_mosaic.version = 11 : i64} {
  func.func @_self_attention_kernel(%arg0: i32, %arg1: memref<1x32xf32, #tpu.memory_space<vmem>>, %arg2: memref<2x8x32xf32, #tpu.memory_space<vmem>>, %arg3: memref<2x8x32xf32, #tpu.memory_space<vmem>>, %arg4: memref<2x64xf32, #tpu.memory_space<vmem>>) attributes {dimension_semantics = [#tpu.dimension_semantics<parallel>], iteration_bounds = array<i64: 1>, scalar_prefetch = 0 : i64, scratch_operands = 0 : i64, tpu.core_type = #tpu.core_type<tc>, window_params = [{pipeline_mode = #tpu.pipeline_mode<synchronous>, transform_indices = @transform_0, window_bounds = array<i64: 1, 32>}, {transform_indices = @transform_1, window_bounds = array<i64: 2, 8, 32>}, {transform_indices = @transform_2, window_bounds = array<i64: 2, 8, 32>}, {transform_indices = @transform_3, window_bounds = array<i64: 2, 64>}]} {
    %c0 = arith.constant 0 : index
    %c0_0 = arith.constant 0 : index
    %c0_1 = arith.constant 0 : index
    %0 = vector.load %arg2[%c0, %c0_0, %c0_1] : memref<2x8x32xf32, #tpu.memory_space<vmem>>, vector<2x8x32xf32>
    %c0_2 = arith.constant 0 : index
    %c0_3 = arith.constant 0 : index
    %1 = vector.load %arg1[%c0_2, %c0_3] : memref<1x32xf32, #tpu.memory_space<vmem>>, vector<1x32xf32>
    %2 = vector.shape_cast %1 : vector<1x32xf32> to vector<1x1x32xf32>
    %3 = vector.broadcast %2 : vector<1x1x32xf32> to vector<2x8x32xf32>
    %4 = arith.mulf %0, %3 : vector<2x8x32xf32>
    %cst = arith.constant dense<0.000000e+00> : vector<2x8xf32>
    %5 = vector.multi_reduction <add>, %4, %cst [2] : vector<2x8x32xf32> to vector<2x8xf32>
    %6 = vector.shape_cast %5 : vector<2x8xf32> to vector<2x8x1xf32>
    %7 = math.tanh %6 : vector<2x8x1xf32>
    %cst_4 = arith.constant dense<0xFF800000> : vector<2x1xf32>
    %8 = vector.multi_reduction <maximumf>, %7, %cst_4 [1] : vector<2x8x1xf32> to vector<2x1xf32>
    %9 = vector.shape_cast %8 : vector<2x1xf32> to vector<2x1x1xf32>
    %10 = vector.broadcast %9 : vector<2x1x1xf32> to vector<2x8x1xf32>
    %11 = arith.subf %7, %10 : vector<2x8x1xf32>
    %12 = math.exp %11 : vector<2x8x1xf32>
    %cst_5 = arith.constant dense<0.000000e+00> : vector<2x1xf32>
    %13 = vector.multi_reduction <add>, %12, %cst_5 [1] : vector<2x8x1xf32> to vector<2x1xf32>
    %14 = vector.shape_cast %13 : vector<2x1xf32> to vector<2x1x1xf32>
    %15 = vector.broadcast %14 : vector<2x1x1xf32> to vector<2x8x1xf32>
    %16 = arith.divf %12, %15 : vector<2x8x1xf32>
    %17 = vector.broadcast %16 : vector<2x8x1xf32> to vector<2x8x32xf32>
    %18 = arith.mulf %0, %17 : vector<2x8x32xf32>
    %cst_6 = arith.constant dense<0.000000e+00> : vector<2x32xf32>
    %19 = vector.multi_reduction <add>, %18, %cst_6 [1] : vector<2x8x32xf32> to vector<2x32xf32>
    %c0_7 = arith.constant 0 : index
    %c0_8 = arith.constant 0 : index
    %c0_9 = arith.constant 0 : index
    %20 = vector.load %arg3[%c0_7, %c0_8, %c0_9] : memref<2x8x32xf32, #tpu.memory_space<vmem>>, vector<2x8x32xf32>
    %cst_10 = arith.constant 9.99999974E-6 : f32
    %21 = vector.broadcast %cst_10 : f32 to vector<2x8x32xf32>
    %22 = arith.mulf %21, %20 : vector<2x8x32xf32>
    %23 = arith.addf %18, %22 : vector<2x8x32xf32>
    %cst_11 = arith.constant dense<0.000000e+00> : vector<2x32xf32>
    %24 = vector.multi_reduction <add>, %23, %cst_11 [1] : vector<2x8x32xf32> to vector<2x32xf32>
    %cst_12 = arith.constant 1.250000e-01 : f32
    %25 = vector.broadcast %cst_12 : f32 to vector<2x32xf32>
    %26 = arith.mulf %24, %25 : vector<2x32xf32>
    %27 = vector.shape_cast %26 : vector<2x32xf32> to vector<2x1x32xf32>
    %28 = vector.broadcast %27 : vector<2x1x32xf32> to vector<2x8x32xf32>
    %29 = arith.subf %23, %28 : vector<2x8x32xf32>
    %30 = arith.mulf %29, %29 : vector<2x8x32xf32>
    %cst_13 = arith.constant dense<0.000000e+00> : vector<2x32xf32>
    %31 = vector.multi_reduction <add>, %30, %cst_13 [1] : vector<2x8x32xf32> to vector<2x32xf32>
    %cst_14 = arith.constant 0.142857149 : f32
    %32 = vector.broadcast %cst_14 : f32 to vector<2x32xf32>
    %33 = arith.mulf %31, %32 : vector<2x32xf32>
    %34 = math.sqrt %33 : vector<2x32xf32>
    %c0_15 = arith.constant 0 : index
    %c0_16 = arith.constant 0 : index
    %35 = vector.load %arg4[%c0_15, %c0_16] : memref<2x64xf32, #tpu.memory_space<vmem>>, vector<2x32xf32>
    tpu.vector_store %arg4[%c0_15, %c0_16], %19 {strides = array<i32>} : memref<2x64xf32, #tpu.memory_space<vmem>>, vector<2x32xf32>,
    %c0_17 = arith.constant 0 : index
    %c32 = arith.constant 32 : index
    %36 = vector.load %arg4[%c0_17, %c32] : memref<2x64xf32, #tpu.memory_space<vmem>>, vector<2x32xf32>
    tpu.vector_store %arg4[%c0_17, %c32], %34 {strides = array<i32>} : memref<2x64xf32, #tpu.memory_space<vmem>>, vector<2x32xf32>,
    return
  }
  func.func @transform_0(%arg0: i32) -> (i32, i32) {
    %c0_i32 = arith.constant 0 : i32
    %c0_i32_0 = arith.constant 0 : i32
    %c0_i32_1 = arith.constant 0 : i32
    return %c0_i32, %c0_i32_0 : i32, i32
  }
  func.func @transform_1(%arg0: i32) -> (i32, i32, i32) {
    %c0_i32 = arith.constant 0 : i32
    %c0_i32_0 = arith.constant 0 : i32
    %c0_i32_1 = arith.constant 0 : i32
    return %arg0, %c0_i32, %c0_i32_0 : i32, i32, i32
  }
  func.func @transform_2(%arg0: i32) -> (i32, i32, i32) {
    %c0_i32 = arith.constant 0 : i32
    %c0_i32_0 = arith.constant 0 : i32
    %c0_i32_1 = arith.constant 0 : i32
    return %arg0, %c0_i32, %c0_i32_0 : i32, i32, i32
  }
  func.func @transform_3(%arg0: i32) -> (i32, i32) {
    %c0_i32 = arith.constant 0 : i32
    %c0_i32_0 = arith.constant 0 : i32
    return %arg0, %c0_i32 : i32, i32
  }
}

</mosaic_0001>

<bundles_post_ra>
// kernel: tpu_custom_call.1
= control target key start
LH: loop header
LB: loop body
LE: loop exit
PB: predicated region body
PF: predicated region fallthrough
CT: control target
= control target key end

     0   :  { %8 = vsyncpa [#allocation3], 0  ;;  %s420_s0 = inlined_call_operand.hbm [shape: f32[1,32], index: 0, kind: input, shape index: {}]   ;;  %s421_s1 = inlined_call_operand.hbm [shape: f32[2,8,32], index: 1, kind: input, shape index: {}]   ;;  %s422_s2 = inlined_call_operand.hbm [shape: f32[2,8,32], index: 2, kind: input, shape index: {}]   ;;  %s423_s3 = inlined_call_operand.hbm [shape: f32[2,64], index: 3, kind: output, shape index: {}]  }
   0x1   :  { %9 = vsyncpa [#allocation6], 0 }
   0x2   :  { %10 = vsyncpa [#allocation4], 0  ;;  %s329_s12 = smov [#allocation5]   ;;  %s235_s16 = scalar_lea.hbm %s421_s1, 256 }
   0x3   :  { %s26_s13 = sshll.u32 %s329_s12, 4  ;;  %p236_p0 = scmp.ne.s32.totalorder %s421_s1, %s235_s16  ;;  %s27_s13 = int_to_ptr.vmem [resolvable:$true] %s26_s13 }
   0x4   :  { %p239_p1 = scmp.lt.u32.totalorder %s235_s16, %s421_s1 }
   0x6   :  { %p241_p2 = pnand %p239_p1, %p236_p0 }
   0x8   :  { %244 = shalt.err (!%p241_p2)
}
   0x9   :  { %s245_s21 = scalar_lea.vmem %s27_s13, 256  ;;  %p250_p4 = scmp.lt.s32.totalorder %s27_s13, %s27_s13 }
   0xa   :  { %p246_p3 = scmp.ne.s32.totalorder %s27_s13, %s245_s21  ;;  %p251_p5 = scmp.lt.s32.totalorder %s245_s21, %s245_s21 }
   0xc   :  { %p252_p6 = por %p251_p5, %p250_p4 }
   0xe   :  { %p253_p7 = pnand %p252_p6, %p246_p3 }
  0x10   :  { %256 = shalt.err (!%p253_p7)
}
  0x11   :  { %s330_s22 = smov 128   ;;  %s331_s23 = smov 8  }
  0x12   :  { %32 = dma.hbm_to_vmem [thread:$0]  %s421_s1, 256, %s27_s13, [#allocation6], %s330_s22, %s330_s22, %s331_s23  }
  0x13   :  { %s332_s26 = smov [#allocation2]   ;;  %s333_s28 = smov [#allocation7]  }
  0x14   :  { %s17_s27 = sshll.u32 %s332_s26, 4  ;;  %s38_s29 = sshll.u32 %s333_s28, 4  ;;  %s18_s27 = int_to_ptr.vmem [resolvable:$true] %s17_s27  ;;  %s39_s29 = int_to_ptr.vmem [resolvable:$true] %s38_s29 }
  0x15   :  { %s257_s5 = scalar_lea.hbm %s420_s0, 16 }
  0x16   :  { %p258_p8 = scmp.ne.s32.totalorder %s420_s0, %s257_s5  ;;  %p261_p9 = scmp.lt.u32.totalorder %s257_s5, %s420_s0 }
  0x18   :  { %p263_p10 = pnand %p261_p9, %p258_p8 }
  0x1a   :  { %266 = shalt.err (!%p263_p10)
}
  0x1b   :  { %s267_s1 = scalar_lea.vmem %s18_s27, 16  ;;  %s271_s10 = scalar_lea.vmem %s18_s27, 32 }
  0x1c   :  { %p268_p11 = scmp.ne.s32.totalorder %s18_s27, %s267_s1  ;;  %p272_p12 = scmp.lt.s32.totalorder %s18_s27, %s18_s27 }
  0x1d   :  { %p273_p13 = scmp.lt.s32.totalorder %s271_s10, %s267_s1 }
  0x1f   :  { %p274_p0 = por %p273_p13, %p272_p12 }
  0x21   :  { %p275_p1 = pnand %p274_p0, %p268_p11 }
  0x23   :  { %278 = shalt.err (!%p275_p1)
}
  0x24   :  { %20 = dma.hbm_to_vmem [thread:$0]  %s420_s0, 16, %s18_s27, [#allocation3]  }
  0x25   :  { %s279_s15 = scalar_lea.hbm %s422_s2, 256 }
  0x26   :  { %p280_p2 = scmp.ne.s32.totalorder %s422_s2, %s279_s15  ;;  %p283_p3 = scmp.lt.u32.totalorder %s279_s15, %s422_s2 }
  0x28   :  { %p285_p4 = pnand %p283_p3, %p280_p2 }
  0x2a   :  { %288 = shalt.err (!%p285_p4)
}
  0x2b   :  { %s289_s20 = scalar_lea.vmem %s39_s29, 256  ;;  %p294_p6 = scmp.lt.s32.totalorder %s39_s29, %s39_s29 }
  0x2c   :  { %p290_p5 = scmp.ne.s32.totalorder %s39_s29, %s289_s20  ;;  %p295_p7 = scmp.lt.s32.totalorder %s289_s20, %s289_s20 }
  0x2e   :  { %p296_p8 = por %p295_p7, %p294_p6 }
  0x30   :  { %p297_p9 = pnand %p296_p8, %p290_p5 }
  0x32   :  { %300 = shalt.err (!%p297_p9)
}
  0x33   :  { %44 = dma.hbm_to_vmem [thread:$0]  %s422_s2, 256, %s39_s29, [#allocation6], %s330_s22, %s330_s22, %s331_s23  }
  0x34   :  { %323 = dma.done.wait [#allocation3], 16  }
  0x35   :  { %324 = vsyncadd [#allocation3], 4294967280 }
  0x36   :  { %325 = dma.done.wait [#allocation6], 512  }
  0x37   :  { %326 = vsyncadd [#allocation6], 4294966784  ;;  %v54_v0 = vld [vmem:[#allocation5] sm:$0xff]  ;;  %v211_v1 = vld [vmem:[#allocation2] ss:$0 sm:$0xff]  ;;  %vm65_vm0 = vcmask 261120  }
  0x38   :  { %v55_v2 = vld [vmem:[#allocation5 + $0x8] sm:$0xff]  ;;  %v63_v3 = vmul.f32 %v211_v1, %v54_v0  ;;  %v124_v41 = vld [vmem:[#allocation7] sm:$0xff]  ;;  %v125_v45 = vld [vmem:[#allocation7 + $0x8] sm:$0xff]  ;;  %vm182_vm1 = vcmask 1041409   ;;  %vm185_vm2 = vcmask 254976   ;;  %s334_s2 = smov 32  }
  0x39   :  { %v64_v4 = vmul.f32 %v211_v1, %v55_v2  ;;  %v126_v44 = vmul.f32 1e-05, %v124_v41  ;;  %v127_v50 = vmul.f32 1e-05, %v125_v45  ;;  %s335_s22 = smov [#allocation8]   ;;  %vm193_vm7 = vcmask 517376  }
  0x3a   :  { %v66_v5 = vsel %vm65_vm0, %v63_v3, 0.0  ;;  %s201_s23 = sshll.u32 %s335_s22, 4  ;;  %s202_s23 = int_to_ptr.vmem [resolvable:$true] %s201_s23 }
  0x3b   :  { %67 = vadd.xlane.f32.xlu0 %v66_v5  ;;  %v69_v6 = vsel %vm65_vm0, %v64_v4, 0.0  ;;  %s301_s24 = scalar_lea.vmem %s202_s23, 32  ;;  %p306_p11 = scmp.lt.s32.totalorder %s202_s23, %s202_s23 }
  0x3c   :  { %p302_p10 = scmp.ne.s32.totalorder %s202_s23, %s301_s24  ;;  %p307_p12 = scmp.lt.s32.totalorder %s301_s24, %s301_s24 }
  0x3e   :  { %p308_p13 = por %p307_p12, %p306_p11 }
  0x3f   :  { %70 = vadd.xlane.f32.xlu0 %v69_v6 }
  0x40   :  { %p309_p0 = pnand %p308_p13, %p302_p10 }
  0xc8   :  { %v68_v7 = vpop.xlane.xlu0 %67 }
  0xc9   :  { %219 = vtanh.f32 %v68_v7 }
  0xcc   :  { %v71_v8 = vpop.xlane.xlu0 %70 }
  0xcd   :  { %221 = vtanh.f32 %v71_v8 }
  0xd3   :  { %v220_v9 = vpop.eup %219 }
  0xd4   :  { %v74_v10 = vrot.slane %v220_v9, 4 }
  0xd6   :  { %v75_v11 = vmax.f32 %v220_v9, %v74_v10 }
  0xd7   :  { %v222_v12 = vpop.eup %221 }
  0xd8   :  { %v76_v13 = vrot.slane %v75_v11, 2  ;;  %v80_v14 = vrot.slane %v222_v12, 4 }
  0xda   :  { %v77_v15 = vmax.f32 %v75_v11, %v76_v13  ;;  %v81_v16 = vmax.f32 %v222_v12, %v80_v14 }
  0xdc   :  { %v78_v17 = vrot.slane %v77_v15, 1  ;;  %v82_v18 = vrot.slane %v81_v16, 2 }
  0xde   :  { %v79_v19 = vmax.f32 %v77_v15, %v78_v17  ;;  %v83_v20 = vmax.f32 %v81_v16, %v82_v18 }
  0xe0   :  { %v86_v21 = vsub.f32 %v220_v9, %v79_v19  ;;  %v84_v22 = vrot.slane %v83_v20, 1 }
  0xe2   :  { %v88_v23 = vmul.f32 1.442695, %v86_v21  ;;  %v85_v24 = vmax.f32 %v83_v20, %v84_v22 }
  0xe4   :  { %223 = vpow2.f32 %v88_v23  ;;  %v87_v25 = vsub.f32 %v222_v12, %v85_v24 }
  0xe6   :  { %v90_v26 = vmul.f32 1.442695, %v87_v25 }
  0xe8   :  { %225 = vpow2.f32 %v90_v26 }
  0xee   :  { %v224_v27 = vpop.eup %223 }
  0xef   :  { %v92_v28 = vrot.slane %v224_v27, 4 }
  0xf1   :  { %v93_v29 = vadd.f32 %v224_v27, %v92_v28 }
  0xf2   :  { %v226_v30 = vpop.eup %225 }
  0xf3   :  { %v94_v31 = vrot.slane %v93_v29, 2  ;;  %v98_v32 = vrot.slane %v226_v30, 4 }
  0xf5   :  { %v95_v33 = vadd.f32 %v94_v31, %v93_v29  ;;  %v99_v34 = vadd.f32 %v226_v30, %v98_v32 }
  0xf7   :  { %v96_v35 = vrot.slane %v95_v33, 1  ;;  %v100_v36 = vrot.slane %v99_v34, 2 }
  0xf9   :  { %v97_v37 = vadd.f32 %v96_v35, %v95_v33  ;;  %v101_v38 = vadd.f32 %v100_v36, %v99_v34 }
  0xfb   :  { %v102_v39 = vrot.slane %v101_v38, 1  ;;  %227 = vrcp.f32 %v97_v37 }
  0xfd   :  { %v103_v40 = vadd.f32 %v102_v39, %v101_v38 }
  0xff   :  { %229 = vrcp.f32 %v103_v40 }
 0x105   :  { %v228_v42 = vpop.eup %227 }
 0x106   :  { %v105_v43 = vmul.f32 %v228_v42, %v224_v27 }
 0x108   :  { %v108_v46 = vmul.f32 %v105_v43, %v54_v0 }
 0x109   :  { %v230_v47 = vpop.eup %229 }
 0x10a   :  { %v107_v48 = vmul.f32 %v230_v47, %v226_v30  ;;  %v110_v49 = vsel %vm65_vm0, %v108_v46, 0.0  ;;  %v128_v51 = vadd.f32 %v126_v44, %v108_v46 }
 0x10b   :  { %v111_v52 = vrot.slane %v110_v49, 4 }
 0x10c   :  { %v109_v53 = vmul.f32 %v107_v48, %v55_v2  ;;  %v130_v54 = vsel %vm65_vm0, %v128_v51, 0.0 }
 0x10d   :  { %v112_v55 = vadd.f32 %v111_v52, %v110_v49  ;;  %v131_v56 = vrot.slane %v130_v54, 4 }
 0x10e   :  { %v129_v57 = vadd.f32 %v127_v50, %v109_v53  ;;  %v117_v58 = vsel %vm65_vm0, %v109_v53, 0.0 }
 0x10f   :  { %v113_v59 = vrot.slane %v112_v55, 2  ;;  %v132_v60 = vadd.f32 %v131_v56, %v130_v54  ;;  %v118_v61 = vrot.slane %v117_v58, 4 }
 0x110   :  { %v137_v62 = vsel %vm65_vm0, %v129_v57, 0.0 }
 0x111   :  { %v114_v63 = vadd.f32 %v113_v59, %v112_v55  ;;  %v133_v0 = vrot.slane %v132_v60, 2  ;;  %v138_v1 = vrot.slane %v137_v62, 4  ;;  %v119_v3 = vadd.f32 %v118_v61, %v117_v58 }
 0x113   :  { %v134_v4 = vadd.f32 %v133_v0, %v132_v60  ;;  %v139_v5 = vadd.f32 %v138_v1, %v137_v62  ;;  %v120_v6 = vrot.slane %v119_v3, 2  ;;  %v115_v2 = vrot.slane %v114_v63, 1 }
 0x115   :  { %v135_v7 = vrot.slane %v134_v4, 1  ;;  %v140_v8 = vrot.slane %v139_v5, 2  ;;  %v121_v9 = vadd.f32 %v120_v6, %v119_v3  ;;  %v116_v13 = vadd.f32 %v115_v2, %v114_v63 }
 0x117   :  { %v136_v10 = vadd.f32 %v135_v7, %v134_v4  ;;  %v141_v11 = vadd.f32 %v140_v8, %v139_v5  ;;  %v122_v12 = vrot.slane %v121_v9, 1 }
 0x119   :  { %v142_v14 = vrot.slane %v141_v11, 1  ;;  %v144_v15 = vmul.f32 0.125, %v136_v10  ;;  %v123_v16 = vadd.f32 %v122_v12, %v121_v9 }
 0x11b   :  { %v143_v17 = vadd.f32 %v142_v14, %v141_v11  ;;  %v146_v18 = vsub.f32 %v128_v51, %v144_v15  ;;  %v183_v19 = vsel %vm182_vm1, %v123_v16, %v116_v13 }
 0x11c   :  { %186 = vst.msk [vmem:[#allocation8] sm:$0x3] %vm185_vm2, %v183_v19 }
 0x11d   :  { %v145_v20 = vmul.f32 0.125, %v143_v17  ;;  %v148_v21 = vmul.f32 %v146_v18, %v146_v18 }
 0x11f   :  { %v147_v22 = vsub.f32 %v129_v57, %v145_v20  ;;  %v150_v23 = vsel %vm65_vm0, %v148_v21, 0.0 }
 0x120   :  { %v151_v24 = vrot.slane %v150_v23, 4 }
 0x121   :  { %v149_v25 = vmul.f32 %v147_v22, %v147_v22 }
 0x122   :  { %v152_v26 = vadd.f32 %v151_v24, %v150_v23 }
 0x123   :  { %v157_v27 = vsel %vm65_vm0, %v149_v25, 0.0 }
 0x124   :  { %v153_v28 = vrot.slane %v152_v26, 2  ;;  %v158_v29 = vrot.slane %v157_v27, 4 }
 0x126   :  { %v154_v30 = vadd.f32 %v153_v28, %v152_v26  ;;  %v159_v31 = vadd.f32 %v158_v29, %v157_v27 }
 0x128   :  { %v155_v32 = vrot.slane %v154_v30, 1  ;;  %v160_v33 = vrot.slane %v159_v31, 2 }
 0x12a   :  { %v156_v34 = vadd.f32 %v155_v32, %v154_v30  ;;  %v161_v35 = vadd.f32 %v160_v33, %v159_v31 }
 0x12c   :  { %v162_v36 = vrot.slane %v161_v35, 1  ;;  %v164_v37 = vmul.f32 0.14285715, %v156_v34 }
 0x12e   :  { %v163_v38 = vadd.f32 %v162_v36, %v161_v35  ;;  %231 = vrsqrt.f32 %v164_v37  ;;  %vm168_vm3 = vcmp.eq.f32.partialorder %v164_v37, inf  ;;  %v171_v45 = vand.u32 2147483648, %v164_v37 }
 0x12f   :  { %vm170_vm5 = vcmp.eq.f32.partialorder %v164_v37, 0.0 }
 0x130   :  { %v165_v39 = vmul.f32 0.14285715, %v163_v38 }
 0x132   :  { %233 = vrsqrt.f32 %v165_v39  ;;  %vm175_vm4 = vcmp.eq.f32.partialorder %v165_v39, inf  ;;  %v178_v46 = vand.u32 2147483648, %v165_v39  ;;  %vm177_vm6 = vcmp.eq.f32.partialorder %v165_v39, 0.0 }
 0x138   :  { %v232_v40 = vpop.eup %231 }
 0x139   :  { %v167_v41 = vmul.f32 %v232_v40, %v164_v37 }
 0x13b   :  { %v169_v43 = vsel %vm168_vm3, %v164_v37, %v167_v41 }
 0x13c   :  { %v234_v42 = vpop.eup %233  ;;  %v172_v48 = vsel %vm170_vm5, %v171_v45, %v169_v43 }
 0x13d   :  { %v174_v44 = vmul.f32 %v234_v42, %v165_v39 }
 0x13f   :  { %v176_v47 = vsel %vm175_vm4, %v165_v39, %v174_v44 }
 0x140   :  { %v179_v49 = vsel %vm177_vm6, %v178_v46, %v176_v47 }
 0x141   :  { %v189_v50 = vsel %vm182_vm1, %v179_v49, %v172_v48 }
 0x142   :  { %190 = vrot.lane.b32.xlu1 %v189_v50, %s334_s2 }
 0x1b4   :  { %v191_v51 = vpop.permute.xlu1 %190 }
 0x1b5   :  { %194 = vst.msk [vmem:[#allocation8] sm:$0x3] %vm193_vm7, %v191_v51 }
 0x1b6   :  { %312 = shalt.err (!%p309_p0)
}
 0x1b7   :  { %s313_s27 = scalar_lea.hbm %s423_s3, 32 }
 0x1b8   :  { %p314_p1 = scmp.ne.s32.totalorder %s423_s3, %s313_s27  ;;  %p317_p2 = scmp.lt.u32.totalorder %s313_s27, %s423_s3 }
 0x1ba   :  { %p319_p3 = pnand %p317_p2, %p314_p1 }
 0x1bc   :  { %322 = shalt.err (!%p319_p3)
}
 0x1bd   :  { %204 = dma.vmem_to_hbm [thread:$0]  %s202_s23, 32, %s423_s3, [#allocation4]  }
 0x1be   :  { %327 = dma.done.wait [#allocation4], 32  }
 0x1bf   :  { %328 = vsyncadd [#allocation4], 4294967264 }
 0x1c0   :  { %208 = vsyncpa [#allocation3], 1 }
 0x1c1   :  { %209 = vsyncpa [#allocation6], 1 }
 0x1c2   :  { %210 = vsyncpa [#allocation4], 1 }

</bundles_post_ra>
